<compile_context>
chip_gen: v7x
topology: tpu7x:2x2x1
jax: 0.10.0
libtpu: 0.0.40
codegen_flags: <defaults>
</compile_context>

<pallas_src>
import functools

import jax
import jax.numpy as jnp
from jax.experimental import pallas as pl
from jax.experimental.pallas import tpu as pltpu

HIDDEN = 128
Z_DIM = 2


def _round_up(n, m):
    return ((n + m - 1) // m) * m


def _leaky_relu(h, slope=0.2):
    # slope < 1  =>  max(h, slope*h) == LeakyReLU(h)
    return jnp.maximum(h, slope * h)


def discriminator_kernel(x_ref, w1_ref, b1_ref, w2_ref, b2_ref, w3_ref, b3_ref,
                         o_ref):
    # In-kernel f32 -> bf16 cast of the streamed x tile (keeps total HBM
    # traffic for x to a single f32 read; no separate XLA convert/pad pass).
    xb = x_ref[...].astype(jnp.bfloat16)
    # Layer 1: Linear(x_dim, 128) + LeakyReLU(0.2)  (bf16 MXU, f32 accum)
    h = jnp.dot(xb, w1_ref[...], preferred_element_type=jnp.float32)
    h = _leaky_relu(h + b1_ref[...])
    # Layer 2: Linear(128, 128) + LeakyReLU(0.2)
    h = jnp.dot(h.astype(jnp.bfloat16), w2_ref[...],
                preferred_element_type=jnp.float32)
    h = _leaky_relu(h + b2_ref[...])
    # Layer 3: Linear(128, z_dim)
    h = jnp.dot(h.astype(jnp.bfloat16), w3_ref[...],
                preferred_element_type=jnp.float32)
    o_ref[...] = (h + b3_ref[...]).astype(o_ref.dtype)


@functools.partial(jax.jit, static_argnames=("block_rows",))
def discriminator_forward(x, params, *, block_rows=4096):
    """x: (B, x_dim) float32.  params: dict w1,b1,w2,b2,w3,b3 (W as (in,out)).

    Weights may be f32 or pre-cast bf16 (prepare_discriminator_params); the
    astype below is a no-op when they are already bf16."""
    w1 = params["w1"].astype(jnp.bfloat16)
    w2 = params["w2"].astype(jnp.bfloat16)
    w3 = params["w3"].astype(jnp.bfloat16)
    b1 = params["b1"].astype(jnp.float32)
    b2 = params["b2"].astype(jnp.float32)
    b3 = params["b3"].astype(jnp.float32)

    B, x_dim = x.shape
    hidden = w1.shape[1]
    z_dim = w3.shape[1]

    # Batch tile: big (amortizes per-grid-step overhead), rounded to 16 rows
    # (bf16 sublane packing for the in-kernel cast), and capped at ceil(B/2)
    # so there are always >= 2 tiles for v7x's two TensorCores to share.
    tm = min(block_rows, _round_up(max((B + 1) // 2, 8), 16))
    grid_b = pl.cdiv(B, tm)  # last tile may be partial: reads padded, writes masked

    resident = lambda shape: pl.BlockSpec(shape, lambda i: (0,) * len(shape))

    out = pl.pallas_call(
        discriminator_kernel,
        out_shape=jax.ShapeDtypeStruct((B, z_dim), jnp.float32),
        grid=(grid_b,),
        in_specs=[
            pl.BlockSpec((tm, x_dim), lambda i: (i, 0)),        # x tile (streamed f32)
            resident((x_dim, hidden)), resident((1, hidden)),   # w1, b1 (VMEM-resident)
            resident((hidden, hidden)), resident((1, hidden)),  # w2, b2
            resident((hidden, z_dim)), resident((1, z_dim)),    # w3, b3
        ],
        out_specs=pl.BlockSpec((tm, z_dim), lambda i: (i, 0)),
        compiler_params=pltpu.CompilerParams(
            dimension_semantics=("parallel",),   # shards batch tiles across TCs on v7x
            vmem_limit_bytes=32 * 1024 * 1024,   # headroom on v5e (16 MiB default scoped)
        ),
    )(x, w1, b1, w2, b2, w3, b3)
    return out


def prepare_discriminator_params(params):
    """One-time weight cast to bf16 (biases stay f32). Do this outside the
    per-step forward so the ~100 KiB convert isn't repeated every call."""
    return {
        "w1": params["w1"].astype(jnp.bfloat16),
        "w2": params["w2"].astype(jnp.bfloat16),
        "w3": params["w3"].astype(jnp.bfloat16),
        "b1": params["b1"].astype(jnp.float32),
        "b2": params["b2"].astype(jnp.float32),
        "b3": params["b3"].astype(jnp.float32),
    }


def init_discriminator_params(key, x_dim=100, z_dim=Z_DIM, hidden=HIDDEN):
    """Deterministic init mimicking torch.nn.Linear defaults (+-1/sqrt(fan_in)).

    Weights stored as (in_features, out_features)."""
    ks = jax.random.split(key, 6)

    def layer(kw, kb, fan_in, fan_out):
        bound = 1.0 / jnp.sqrt(fan_in)
        w = jax.random.uniform(kw, (fan_in, fan_out), jnp.float32, -bound, bound)
        b = jax.random.uniform(kb, (1, fan_out), jnp.float32, -bound, bound)
        return w, b

    w1, b1 = layer(ks[0], ks[1], x_dim, hidden)
    w2, b2 = layer(ks[2], ks[3], hidden, hidden)
    w3, b3 = layer(ks[4], ks[5], hidden, z_dim)
    return {"w1": w1, "b1": b1, "w2": w2, "b2": b2, "w3": w3, "b3": b3}


def discriminator_reference_f32(x, params):
    """Plain-JAX full-f32 reference (module semantics)."""
    h = x @ params["w1"] + params["b1"]
    h = jnp.where(h > 0, h, 0.2 * h)
    h = h @ params["w2"] + params["b2"]
    h = jnp.where(h > 0, h, 0.2 * h)
    return h @ params["w3"] + params["b3"]


def discriminator_reference_bf16(x, params):
    """Plain-JAX reference mirroring the kernel's bf16-operand / f32-accum math."""
    h = jnp.dot(x.astype(jnp.bfloat16), params["w1"].astype(jnp.bfloat16),
                preferred_element_type=jnp.float32) + params["b1"]
    h = jnp.maximum(h, 0.2 * h)
    h = jnp.dot(h.astype(jnp.bfloat16), params["w2"].astype(jnp.bfloat16),
                preferred_element_type=jnp.float32) + params["b2"]
    h = jnp.maximum(h, 0.2 * h)
    return jnp.dot(h.astype(jnp.bfloat16), params["w3"].astype(jnp.bfloat16),
                   preferred_element_type=jnp.float32) + params["b3"]


if __name__ == "__main__":
    key = jax.random.PRNGKey(0)
    k_x, k_p, k_x2 = jax.random.split(key, 3)

    B, X_DIM = 8, 100  # z_dim=2 per the script's global
    params_f32 = init_discriminator_params(k_p, x_dim=X_DIM, z_dim=Z_DIM)
    params = prepare_discriminator_params(params_f32)

    # Small-shape check (single tile).
    x = jax.random.normal(k_x, (B, X_DIM), jnp.float32)
    out = jax.block_until_ready(discriminator_forward(x, params))
    assert out.shape == (B, Z_DIM)
    ref_bf16 = discriminator_reference_bf16(x, params_f32)
    ref_f32 = discriminator_reference_f32(x, params_f32)
    assert jnp.allclose(out, ref_bf16, atol=2e-3, rtol=2e-3), "mismatch vs bf16 ref"
    assert jnp.allclose(out, ref_f32, atol=5e-2, rtol=5e-2), "mismatch vs f32 ref"

    # Multi-tile / ragged-batch check (exercises the batch grid + the
    # partial edge block's padded reads / masked writes, no wrapper padding).
    B2 = 1000
    x2 = jax.random.normal(k_x2, (B2, X_DIM), jnp.float32)
    out2 = jax.block_until_ready(discriminator_forward(x2, params, block_rows=256))
    assert out2.shape == (B2, Z_DIM)
    ref2 = discriminator_reference_bf16(x2, params_f32)
    assert jnp.allclose(out2, ref2, atol=2e-3, rtol=2e-3), "mismatch (multi-tile)"

    print("KERNEL_OK")
</pallas_src>

<mosaic_0001>
module attributes {stable_mosaic.version = 11 : i64} {
  func.func @discriminator_kernel(%arg0: i32, %arg1: memref<16x100xf32, #tpu.memory_space<vmem>>, %arg2: memref<100x128xbf16, #tpu.memory_space<vmem>>, %arg3: memref<1x128xf32, #tpu.memory_space<vmem>>, %arg4: memref<128x128xbf16, #tpu.memory_space<vmem>>, %arg5: memref<1x128xf32, #tpu.memory_space<vmem>>, %arg6: memref<128x2xbf16, #tpu.memory_space<vmem>>, %arg7: memref<1x2xf32, #tpu.memory_space<vmem>>, %arg8: memref<16x2xf32, #tpu.memory_space<vmem>>) attributes {dimension_semantics = [#tpu.dimension_semantics<parallel>], iteration_bounds = array<i64: 1>, scalar_prefetch = 0 : i64, scratch_operands = 0 : i64, tpu.core_type = #tpu.core_type<tc>, window_params = [{transform_indices = @transform_0, window_bounds = array<i64: 16, 100>}, {pipeline_mode = #tpu.pipeline_mode<synchronous>, transform_indices = @transform_1, window_bounds = array<i64: 100, 128>}, {pipeline_mode = #tpu.pipeline_mode<synchronous>, transform_indices = @transform_2, window_bounds = array<i64: 1, 128>}, {pipeline_mode = #tpu.pipeline_mode<synchronous>, transform_indices = @transform_3, window_bounds = array<i64: 128, 128>}, {pipeline_mode = #tpu.pipeline_mode<synchronous>, transform_indices = @transform_4, window_bounds = array<i64: 1, 128>}, {pipeline_mode = #tpu.pipeline_mode<synchronous>, transform_indices = @transform_5, window_bounds = array<i64: 128, 2>}, {pipeline_mode = #tpu.pipeline_mode<synchronous>, transform_indices = @transform_6, window_bounds = array<i64: 1, 2>}, {transform_indices = @transform_7, window_bounds = array<i64: 16, 2>}]} {
    %c0 = arith.constant 0 : index
    %c0_0 = arith.constant 0 : index
    %0 = vector.load %arg1[%c0, %c0_0] : memref<16x100xf32, #tpu.memory_space<vmem>>, vector<16x100xf32>
    %1 = arith.truncf %0 : vector<16x100xf32> to vector<16x100xbf16>
    %c0_1 = arith.constant 0 : index
    %c0_2 = arith.constant 0 : index
    %2 = vector.load %arg2[%c0_1, %c0_2] : memref<100x128xbf16, #tpu.memory_space<vmem>>, vector<100x128xbf16>
    %cst = arith.constant dense<0.000000e+00> : vector<16x128xf32>
    %3 = tpu.matmul %1, %2, %cst {dimension_numbers = #tpu.dot_dimension_numbers<[1], [0], [0], [1], [0, 0, 1, 1], [], []>} : vector<16x100xbf16>, vector<100x128xbf16>, vector<16x128xf32> -> vector<16x128xf32>
    %c0_3 = arith.constant 0 : index
    %c0_4 = arith.constant 0 : index
    %4 = vector.load %arg3[%c0_3, %c0_4] : memref<1x128xf32, #tpu.memory_space<vmem>>, vector<1x128xf32>
    %5 = vector.broadcast %4 : vector<1x128xf32> to vector<16x128xf32>
    %6 = arith.addf %3, %5 : vector<16x128xf32>
    %cst_5 = arith.constant 2.000000e-01 : f32
    %7 = vector.broadcast %cst_5 : f32 to vector<16x128xf32>
    %8 = arith.mulf %7, %6 : vector<16x128xf32>
    %9 = arith.maximumf %6, %8 : vector<16x128xf32>
    %10 = arith.truncf %9 : vector<16x128xf32> to vector<16x128xbf16>
    %c0_6 = arith.constant 0 : index
    %c0_7 = arith.constant 0 : index
    %11 = vector.load %arg4[%c0_6, %c0_7] : memref<128x128xbf16, #tpu.memory_space<vmem>>, vector<128x128xbf16>
    %cst_8 = arith.constant dense<0.000000e+00> : vector<16x128xf32>
    %12 = tpu.matmul %10, %11, %cst_8 {dimension_numbers = #tpu.dot_dimension_numbers<[1], [0], [0], [1], [0, 0, 1, 1], [], []>} : vector<16x128xbf16>, vector<128x128xbf16>, vector<16x128xf32> -> vector<16x128xf32>
    %c0_9 = arith.constant 0 : index
    %c0_10 = arith.constant 0 : index
    %13 = vector.load %arg5[%c0_9, %c0_10] : memref<1x128xf32, #tpu.memory_space<vmem>>, vector<1x128xf32>
    %14 = vector.broadcast %13 : vector<1x128xf32> to vector<16x128xf32>
    %15 = arith.addf %12, %14 : vector<16x128xf32>
    %cst_11 = arith.constant 2.000000e-01 : f32
    %16 = vector.broadcast %cst_11 : f32 to vector<16x128xf32>
    %17 = arith.mulf %16, %15 : vector<16x128xf32>
    %18 = arith.maximumf %15, %17 : vector<16x128xf32>
    %19 = arith.truncf %18 : vector<16x128xf32> to vector<16x128xbf16>
    %c0_12 = arith.constant 0 : index
    %c0_13 = arith.constant 0 : index
    %20 = vector.load %arg6[%c0_12, %c0_13] : memref<128x2xbf16, #tpu.memory_space<vmem>>, vector<128x2xbf16>
    %cst_14 = arith.constant dense<0.000000e+00> : vector<16x2xf32>
    %21 = tpu.matmul %19, %20, %cst_14 {dimension_numbers = #tpu.dot_dimension_numbers<[1], [0], [0], [1], [0, 0, 1, 1], [], []>} : vector<16x128xbf16>, vector<128x2xbf16>, vector<16x2xf32> -> vector<16x2xf32>
    %c0_15 = arith.constant 0 : index
    %c0_16 = arith.constant 0 : index
    %22 = vector.load %arg7[%c0_15, %c0_16] : memref<1x2xf32, #tpu.memory_space<vmem>>, vector<1x2xf32>
    %23 = vector.broadcast %22 : vector<1x2xf32> to vector<16x2xf32>
    %24 = arith.addf %21, %23 : vector<16x2xf32>
    %c0_17 = arith.constant 0 : index
    %c0_18 = arith.constant 0 : index
    %25 = vector.load %arg8[%c0_17, %c0_18] : memref<16x2xf32, #tpu.memory_space<vmem>>, vector<16x2xf32>
    tpu.vector_store %arg8[%c0_17, %c0_18], %24 {strides = array<i32>} : memref<16x2xf32, #tpu.memory_space<vmem>>, vector<16x2xf32>,
    return
  }
  func.func @transform_0(%arg0: i32) -> (i32, i32) {
    %c0_i32 = arith.constant 0 : i32
    %c0_i32_0 = arith.constant 0 : i32
    return %arg0, %c0_i32 : i32, i32
  }
  func.func @transform_1(%arg0: i32) -> (i32, i32) {
    %c0_i32 = arith.constant 0 : i32
    %c0_i32_0 = arith.constant 0 : i32
    %c0_i32_1 = arith.constant 0 : i32
    return %c0_i32, %c0_i32_0 : i32, i32
  }
  func.func @transform_2(%arg0: i32) -> (i32, i32) {
    %c0_i32 = arith.constant 0 : i32
    %c0_i32_0 = arith.constant 0 : i32
    %c0_i32_1 = arith.constant 0 : i32
    return %c0_i32, %c0_i32_0 : i32, i32
  }
  func.func @transform_3(%arg0: i32) -> (i32, i32) {
    %c0_i32 = arith.constant 0 : i32
    %c0_i32_0 = arith.constant 0 : i32
    %c0_i32_1 = arith.constant 0 : i32
    return %c0_i32, %c0_i32_0 : i32, i32
  }
  func.func @transform_4(%arg0: i32) -> (i32, i32) {
    %c0_i32 = arith.constant 0 : i32
    %c0_i32_0 = arith.constant 0 : i32
    %c0_i32_1 = arith.constant 0 : i32
    return %c0_i32, %c0_i32_0 : i32, i32
  }
  func.func @transform_5(%arg0: i32) -> (i32, i32) {
    %c0_i32 = arith.constant 0 : i32
    %c0_i32_0 = arith.constant 0 : i32
    %c0_i32_1 = arith.constant 0 : i32
    return %c0_i32, %c0_i32_0 : i32, i32
  }
  func.func @transform_6(%arg0: i32) -> (i32, i32) {
    %c0_i32 = arith.constant 0 : i32
    %c0_i32_0 = arith.constant 0 : i32
    %c0_i32_1 = arith.constant 0 : i32
    return %c0_i32, %c0_i32_0 : i32, i32
  }
  func.func @transform_7(%arg0: i32) -> (i32, i32) {
    %c0_i32 = arith.constant 0 : i32
    %c0_i32_0 = arith.constant 0 : i32
    return %arg0, %c0_i32 : i32, i32
  }
}

</mosaic_0001>

<bundles_post_ra>
// kernel: discriminator_forward.1
= control target key start
LH: loop header
LB: loop body
LE: loop exit
PB: predicated region body
PF: predicated region fallthrough
CT: control target
= control target key end

     0   :  { %12 = vsyncpa [#allocation3], 0  ;;  %s593_s24 = smov [#allocation2]   ;;  %s745_s0 = inlined_call_operand.vmem [shape: f32[8,100], index: 0, kind: input, shape index: {}]   ;;  %s746_s1 = inlined_call_operand.hbm [shape: bf16[100,128], index: 1, kind: input, shape index: {}]   ;;  %s747_s2 = inlined_call_operand.vmem [shape: f32[1,128], index: 2, kind: input, shape index: {}]   ;;  %s748_s3 = inlined_call_operand.vmem [shape: bf16[128,128], index: 3, kind: input, shape index: {}]   ;;  %s749_s4 = inlined_call_operand.vmem [shape: f32[1,128], index: 4, kind: input, shape index: {}]   ;;  %s750_s5 = inlined_call_operand.vmem [shape: bf16[128,2], index: 5, kind: input, shape index: {}]   ;;  %s751_s6 = inlined_call_operand.vmem [shape: f32[1,2], index: 6, kind: input, shape index: {}]   ;;  %s752_s7 = inlined_call_operand.vmem [shape: f32[8,2], index: 7, kind: output, shape index: {}]  }
   0x1   :  { %s20_s25 = sshll.u32 %s593_s24, 4  ;;  %s569_s28 = scalar_lea.hbm %s746_s1, 832  ;;  %s21_s25 = int_to_ptr.vmem [resolvable:$true] %s20_s25 }
   0x2   :  { %p570_p0 = scmp.ne.s32.totalorder %s746_s1, %s569_s28  ;;  %p573_p1 = scmp.lt.u32.totalorder %s569_s28, %s746_s1 }
   0x4   :  { %p575_p2 = pnand %p573_p1, %p570_p0 }
   0x6   :  { %578 = shalt.err (!%p575_p2)
}
   0x7   :  { %s579_s10 = scalar_lea.vmem %s21_s25, 832  ;;  %p584_p4 = scmp.lt.s32.totalorder %s21_s25, %s21_s25 }
   0x8   :  { %p580_p3 = scmp.ne.s32.totalorder %s21_s25, %s579_s10  ;;  %p585_p5 = scmp.lt.s32.totalorder %s579_s10, %s579_s10 }
   0xa   :  { %p586_p6 = por %p585_p5, %p584_p4 }
   0xc   :  { %p587_p7 = pnand %p586_p6, %p580_p3 }
   0xe   :  { %590 = shalt.err (!%p587_p7)
}
   0xf   :  { %s594_s11 = smov 64   ;;  %s595_s12 = smov 4  }
  0x10   :  { %26 = dma.hbm_to_vmem [thread:$0]  %s746_s1, 832, %s21_s25, [#allocation3], %s594_s11, %s594_s11, %s595_s12  }
  0x11   :  { %591 = dma.done.wait [#allocation3], 832  }
  0x12   :  { %592 = vsyncadd [#allocation3], 4294966464  ;;  %v596_v0 = vmov 0.0   ;;  %vm597_vm0 = vmmov 0   ;;  %v546_v1 = vld [vmem:[#allocation2] sm:$0xff]   ;;  %v547_v2 = vld [vmem:[#allocation2 + $0x8] sm:$0xff]  }
  0x13   :  { %483 = vmatprep.subr.bf16.mxu0 %v596_v0  ;;  %497 = vmatprep.mubr.msk.bf16.mxu0 %vm597_vm0, %v596_v0  ;;  %v548_v3 = vld [vmem:[#allocation2 + $0x10] sm:$0xff]   ;;  %v553_v4 = vld [vmem:[%s748_s3] sm:$0xff]   ;;  %v549_v5 = vld [vmem:[#allocation2 + $0x18] sm:$0xff]   ;;  %vm107_vm1 = vcmask 1041408   ;;  %vm103_vm2 = vcmask 818176   ;;  %vm386_vm3 = vcmask 15360  }
  0x14   :  { %501 = vmatprep.subr.bf16.mxu1 %v596_v0  ;;  %517 = vmatprep.mubr.msk.bf16.mxu1 %vm597_vm0, %v596_v0  ;;  %v554_v6 = vld [vmem:[%s748_s3 + $0x8] sm:$0xff]   ;;  %v550_v7 = vld [vmem:[#allocation2 + $0x20] sm:$0xff]   ;;  %v555_v8 = vld [vmem:[%s748_s3 + $0x10] sm:$0xff]  }
  0x15   :  { %484 = vmatpush3.bf16.msra.mxu0 %v546_v1  ;;  %502 = vmatpush3.bf16.msra.mxu1 %v553_v4  ;;  %v551_v9 = vld [vmem:[#allocation2 + $0x28] sm:$0xff]   ;;  %v556_v10 = vld [vmem:[%s748_s3 + $0x18] sm:$0xff]   ;;  %v552_v11 = vld [vmem:[#allocation2 + $0x30] ss:$0 sps:$4 sm:$0x33]  }
  0x16   :  { %485 = vmatprep.subr.bf16.mxu0 %v596_v0  ;;  %503 = vmatprep.subr.bf16.mxu1 %v596_v0  ;;  %v41_v12 = vld [vmem:[%s745_s0] sm:$0xff]  ;;  %v42_v13 = vld [vmem:[%s745_s0 + $0x8] sm:$0xff]  ;;  %v109_v15 = vsel %vm107_vm1, %v552_v11, 0  ;;  %v559_v18 = vld [vmem:[%s748_s3 + $0x30] sm:$0xff]  }
  0x17   :  { %v557_v14 = vld [vmem:[%s748_s3 + $0x20] sm:$0xff]   ;;  %v43_v16 = vpack.c.bf16 %v42_v13, %v41_v12  ;;  %v558_v17 = vld [vmem:[%s748_s3 + $0x28] sm:$0xff]   ;;  %v560_v19 = vld [vmem:[%s748_s3 + $0x38] sm:$0xff]  }
  0x18   :  { %v561_v20 = vld [vmem:[%s750_s5] sm:$0xff]   ;;  %v562_v21 = vld [vmem:[%s750_s5 + $0x8] sm:$0xff]   ;;  %v563_v22 = vld [vmem:[%s750_s5 + $0x10] sm:$0xff]  }
  0x19   :  { %486 = vmatpush3.bf16.msra.mxu0 %v547_v2  ;;  %504 = vmatpush3.bf16.msra.mxu1 %v554_v6  ;;  %v564_v23 = vld [vmem:[%s750_s5 + $0x18] sm:$0xff]   ;;  %v565_v24 = vld [vmem:[%s750_s5 + $0x20] sm:$0xff]   ;;  %v566_v37 = vld [vmem:[%s750_s5 + $0x28] sm:$0xff]  }
  0x1a   :  { %487 = vmatprep.subr.bf16.mxu0 %v596_v0  ;;  %505 = vmatprep.subr.bf16.mxu1 %v596_v0  ;;  %v430_v25 = vld [vmem:[%s747_s2] ss:$0 sm:$0xff]  ;;  %v567_v38 = vld [vmem:[%s750_s5 + $0x30] sm:$0xff]   ;;  %v568_v39 = vld [vmem:[%s750_s5 + $0x38] sm:$0xff]  }
  0x1b   :  { %v439_v40 = vld [vmem:[%s749_s4] ss:$0 sm:$0xff] }
  0x1c   :  { %v448_v52 = vld [vmem:[%s751_s6] ss:$0 sm:$0xff] }
  0x1d   :  { %488 = vmatpush3.bf16.msra.mxu0 %v548_v3  ;;  %506 = vmatpush3.bf16.msra.mxu1 %v555_v8 }
  0x1e   :  { %489 = vmatprep.subr.bf16.mxu0 %v596_v0  ;;  %507 = vmatprep.subr.bf16.mxu1 %v596_v0 }
  0x21   :  { %490 = vmatpush3.bf16.msra.mxu0 %v549_v5  ;;  %508 = vmatpush3.bf16.msra.mxu1 %v556_v10 }
  0x22   :  { %491 = vmatprep.subr.bf16.mxu0 %v596_v0  ;;  %509 = vmatprep.subr.bf16.mxu1 %v596_v0 }
  0x25   :  { %492 = vmatpush3.bf16.msra.mxu0 %v550_v7  ;;  %510 = vmatpush3.bf16.msra.mxu1 %v557_v14 }
  0x26   :  { %493 = vmatprep.subr.bf16.mxu0 %v596_v0  ;;  %511 = vmatprep.subr.bf16.mxu1 %v596_v0 }
  0x29   :  { %494 = vmatpush3.bf16.msra.mxu0 %v551_v9  ;;  %512 = vmatpush3.bf16.msra.mxu1 %v558_v17 }
  0x2a   :  { %495 = vmatprep.subr.bf16.mxu0 %v596_v0  ;;  %513 = vmatprep.subr.bf16.mxu1 %v596_v0 }
  0x2d   :  { %496 = vmatpush3.bf16.msra.mxu0 %v109_v15  ;;  %514 = vmatpush3.bf16.msra.mxu1 %v559_v18 }
  0x2e   :  { %521 = vmatprep.subr.bf16.mxu0 %v596_v0  ;;  %515 = vmatprep.subr.bf16.mxu1 %v596_v0 }
  0x30   :  { %498 = vmatmul.mubr.msk.bf16.vlgmr.msra.gmra.mrb[0].mxu0 %vm103_vm2, %v43_v16 }
  0x31   :  { %537 = vmatprep.mubr.msk.bf16.mxu0 %vm597_vm0, %v596_v0  ;;  %516 = vmatpush3.bf16.msra.mxu1 %v560_v19 }
  0x32   :  { %522 = vmatpush3.bf16.msra.mxu0 %v561_v20 }
  0x33   :  { %523 = vmatprep.subr.bf16.mxu0 %v596_v0 }
  0x36   :  { %524 = vmatpush3.bf16.msra.mxu0 %v562_v21 }
  0x37   :  { %525 = vmatprep.subr.bf16.mxu0 %v596_v0 }
  0x3a   :  { %526 = vmatpush3.bf16.msra.mxu0 %v563_v22 }
  0x3b   :  { %527 = vmatprep.subr.bf16.mxu0 %v596_v0 }
  0x3e   :  { %528 = vmatpush3.bf16.msra.mxu0 %v564_v23 }
  0x3f   :  { %529 = vmatprep.subr.bf16.mxu0 %v596_v0 }
  0x42   :  { %530 = vmatpush3.bf16.msra.mxu0 %v565_v24 }
  0x43   :  { %531 = vmatprep.subr.bf16.mxu0 %v596_v0 }
  0x46   :  { %532 = vmatpush3.bf16.msra.mxu0 %v566_v37 }
  0x47   :  { %533 = vmatprep.subr.bf16.mxu0 %v596_v0 }
  0x4a   :  { %534 = vmatpush3.bf16.msra.mxu0 %v567_v38 }
  0x4b   :  { %535 = vmatprep.subr.bf16.mxu0 %v596_v0 }
  0x4e   :  { %536 = vmatpush3.bf16.msra.mxu0 %v568_v39 }
 0x103   :  { %v145_v26 = vpop.f32.mrb[0].mxu0 }
 0x104   :  { %v146_v27 = vadd.f32 %v430_v25, %v145_v26  ;;  %v499_v28 = vpop.f32.mrb[1].mxu0 }
 0x105   :  { %v148_v29 = vpop.f32.mrb[2].mxu0 }
 0x106   :  { %v152_v30 = vmul.f32 0.2, %v146_v27  ;;  %v149_v31 = vadd.f32 %v430_v25, %v148_v29  ;;  %v500_v32 = vpop.f32.mrb[3].mxu0 }
 0x108   :  { %v153_v33 = vmul.f32 0.2, %v149_v31  ;;  %v154_v34 = vmax.f32 %v146_v27, %v152_v30 }
 0x10a   :  { %v155_v35 = vmax.f32 %v149_v31, %v153_v33 }
 0x10c   :  { %v156_v36 = vpack.c.bf16 %v155_v35, %v154_v34 }
 0x10e   :  { %518 = vmatmul.mubr.bf16.vlgmr.msra.gmra.mrb[0].mxu1 %v156_v36 }
 0x1e1   :  { %v262_v41 = vpop.f32.mrb[0].mxu1 }
 0x1e2   :  { %v263_v42 = vadd.f32 %v439_v40, %v262_v41  ;;  %v519_v43 = vpop.f32.mrb[1].mxu1 }
 0x1e3   :  { %v265_v44 = vpop.f32.mrb[2].mxu1 }
 0x1e4   :  { %v269_v45 = vmul.f32 0.2, %v263_v42  ;;  %v266_v46 = vadd.f32 %v439_v40, %v265_v44  ;;  %v520_v47 = vpop.f32.mrb[3].mxu1 }
 0x1e6   :  { %v270_v48 = vmul.f32 0.2, %v266_v46  ;;  %v271_v49 = vmax.f32 %v263_v42, %v269_v45 }
 0x1e8   :  { %v272_v50 = vmax.f32 %v266_v46, %v270_v48 }
 0x1ea   :  { %v273_v51 = vpack.c.bf16 %v272_v50, %v271_v49 }
 0x1ec   :  { %538 = vmatmul.mubr.bf16.vlgmr.msra.gmra.mrb[4].mxu0 %v273_v51 }
 0x2bf   :  { %v379_v53 = vpop.f32.mrb[4].mxu0 }
 0x2c0   :  { %v380_v54 = vadd.f32 %v448_v52, %v379_v53  ;;  %v539_v55 = vpop.f32.mrb[5].mxu0 }
 0x2c1   :  { %v382_v56 = vpop.f32.mrb[6].mxu0 }
 0x2c2   :  { %387 = vst.msk [vmem:[#allocation4] sm:$0xff] %vm386_vm3, %v380_v54  ;;  %v540_v57 = vpop.f32.mrb[7].mxu0 }
 0x2c9   :  { %v418_v58 = vld [vmem:[#allocation4] sm:$0xff] }
 0x2ca   :  { %419 = vst [vmem:[%s752_s7] sm:$0xff] %v418_v58 }
 0x2cb   :  { %425 = vsyncpa [#allocation3], 1 }

</bundles_post_ra>
